<compile_context>
chip_gen: v7x
topology: tpu7x:2x2x1
jax: 0.10.0
libtpu: 0.0.40
codegen_flags: <defaults>
</compile_context>

<pallas_src>
import functools

import jax
import jax.numpy as jnp
from jax.experimental import pallas as pl
from jax.experimental.pallas import tpu as pltpu

COL_CHAN = 3
IMG_HEIGHT = 32
IMG_WIDTH = 32
IN_DIM = IMG_WIDTH * IMG_HEIGHT * COL_CHAN  # 3072
HID = 100
OUT_DIM = 10

# Lane-padded feature dims (128-lane vregs / MXU columns).
HID_PAD = 128
OUT_PAD = 128

# Batch tile cap. f32 x double-buffer at tb=1024 is ~25 MiB -> fits v7x's 64 MiB VMEM
# with room to spare; bigger tiles only pay off marginally and risk the v7x ceiling.
DEFAULT_BLOCK_B = 1024

_BATCH_QUANTUM = 16  # bf16 packs 16 sublanes per vreg


def _round_up(n, m):
    return (n + m - 1) // m * m


def _cdiv(a, b):
    return -(-a // b)


def _pad_to(a, shape):
    pads = [(0, s - d) for d, s in zip(a.shape, shape)]
    return jnp.pad(a, pads)


def _choose_batch_tile(B, block_b):
    """Pick a batch tile: multiple of 16, <= block_b, and >=2 grid steps when B allows
    (so both v7x TensorCores stream tiles under dimension_semantics=('parallel',))."""
    n_tiles = max(1, _cdiv(B, block_b))
    if n_tiles == 1 and B >= 2 * _BATCH_QUANTUM:
        n_tiles = 2
    return _round_up(_cdiv(B, n_tiles), _BATCH_QUANTUM)


def _vmem_capacity_bytes():
    """Physical VMEM of the attached TPU generation; conservative fallback."""
    try:
        return int(pltpu.get_tpu_info().vmem_capacity_bytes)
    except Exception:
        return 64 << 20  # v7x (smallest of current generations)


def _mlp_kernel(x_ref, w1_ref, b1_ref, w2_ref, b2_ref, w3_ref, b3_ref, o_ref):
    # x_ref : (TB, 3072) f32 (cast to bf16 here, on idle VPU slots)
    # w1    : (3072, 128) bf16   b1: (1, 128) f32
    # w2    : (128, 128)  bf16   b2: (1, 128) f32
    # w3    : (128, 128)  bf16   b3: (1, 128) f32
    # o_ref : (TB, 128) bf16
    x = x_ref[...].astype(jnp.bfloat16)

    h1 = jnp.dot(x, w1_ref[...], preferred_element_type=jnp.float32) + b1_ref[...]
    h1 = jnp.maximum(h1, 0.0).astype(jnp.bfloat16)

    h2 = jnp.dot(h1, w2_ref[...], preferred_element_type=jnp.float32) + b2_ref[...]
    h2 = jnp.maximum(h2, 0.0).astype(jnp.bfloat16)

    h3 = jnp.dot(h2, w3_ref[...], preferred_element_type=jnp.float32) + b3_ref[...]
    o_ref[...] = h3.astype(o_ref.dtype)


@functools.partial(jax.jit, static_argnames=("block_b",))
def mlp_forward(x, params, *, block_b=DEFAULT_BLOCK_B):
    """x: (B, 3, 32, 32) float32 NCHW. Returns (B, 10) float32 logits."""
    w1, b1, w2, b2, w3, b3 = params
    B = x.shape[0]

    # Flatten in C,H,W order exactly like torch's x.view(-1, 3072). (Free view.)
    x2d = x.reshape(B, IN_DIM)

    tb = _choose_batch_tile(B, block_b)
    grid_b = _cdiv(B, tb)
    Bp = grid_b * tb

    # Batch-pad only; NO dtype conversion pass (x streams as f32, cast in-kernel).
    # When B % tb == 0 the pad has zero widths and XLA elides it.
    x_pad = _pad_to(x2d, (Bp, IN_DIM))
    xbytes = x_pad.dtype.itemsize

    # Pad feature dims to 128 lanes (zero rows/cols are numerically inert through
    # ReLU), cast weights to bf16 for the MXU, keep biases f32 (post-accumulation).
    w1p = _pad_to(w1, (IN_DIM, HID_PAD)).astype(jnp.bfloat16)
    b1p = _pad_to(b1, (1, HID_PAD)).astype(jnp.float32)
    w2p = _pad_to(w2, (HID_PAD, HID_PAD)).astype(jnp.bfloat16)
    b2p = _pad_to(b2, (1, HID_PAD)).astype(jnp.float32)
    w3p = _pad_to(w3, (HID_PAD, OUT_PAD)).astype(jnp.bfloat16)
    b3p = _pad_to(b3, (1, OUT_PAD)).astype(jnp.float32)

    # Weights/biases: constant block index -> DMA'd once, resident across grid steps.
    in_specs = [
        pl.BlockSpec((tb, IN_DIM), lambda i: (i, 0)),        # x tile stream (f32)
        pl.BlockSpec((IN_DIM, HID_PAD), lambda i: (0, 0)),   # w1
        pl.BlockSpec((1, HID_PAD), lambda i: (0, 0)),        # b1
        pl.BlockSpec((HID_PAD, HID_PAD), lambda i: (0, 0)),  # w2
        pl.BlockSpec((1, HID_PAD), lambda i: (0, 0)),        # b2
        pl.BlockSpec((HID_PAD, OUT_PAD), lambda i: (0, 0)),  # w3
        pl.BlockSpec((1, OUT_PAD), lambda i: (0, 0)),        # b3
    ]
    out_spec = pl.BlockSpec((tb, OUT_PAD), lambda i: (i, 0))

    weight_bytes = (IN_DIM * HID_PAD + HID_PAD * HID_PAD + HID_PAD * OUT_PAD) * 2 \
                   + 3 * HID_PAD * 4
    # Double-buffered f32 x tile + double-buffered bf16 out tile + (double-buffered)
    # resident weights + headroom; cap by the current generation's physical VMEM.
    footprint = 2 * tb * IN_DIM * xbytes + 2 * tb * OUT_PAD * 2 + 2 * weight_bytes
    vmem_limit = int(min(footprint + (8 << 20), _vmem_capacity_bytes() - (8 << 20)))

    cost = pl.CostEstimate(
        flops=2 * Bp * (IN_DIM * HID_PAD + HID_PAD * HID_PAD + HID_PAD * OUT_PAD),
        transcendentals=0,
        bytes_accessed=Bp * IN_DIM * xbytes + Bp * OUT_PAD * 2 + weight_bytes,
    )

    out_pad = pl.pallas_call(
        _mlp_kernel,
        out_shape=jax.ShapeDtypeStruct((Bp, OUT_PAD), jnp.bfloat16),
        grid=(grid_b,),
        in_specs=in_specs,
        out_specs=out_spec,
        compiler_params=pltpu.CompilerParams(
            dimension_semantics=("parallel",),
            vmem_limit_bytes=vmem_limit,
        ),
        cost_estimate=cost,
    )(x_pad, w1p, b1p, w2p, b2p, w3p, b3p)

    # Tiny (B, 10) cast/slice outside the kernel; keeps module-level f32 semantics.
    return out_pad[:B, :OUT_DIM].astype(jnp.float32)


def init_params(key):
    """Deterministic init matching nn.Linear default (uniform +/- 1/sqrt(fan_in))."""
    def linear(key, fan_in, fan_out):
        kw, kb = jax.random.split(key)
        bound = 1.0 / jnp.sqrt(jnp.float32(fan_in))
        w = jax.random.uniform(kw, (fan_in, fan_out), jnp.float32, -bound, bound)
        b = jax.random.uniform(kb, (1, fan_out), jnp.float32, -bound, bound)
        return w, b

    k1, k2, k3 = jax.random.split(key, 3)
    w1, b1 = linear(k1, IN_DIM, HID)
    w2, b2 = linear(k2, HID, HID)
    w3, b3 = linear(k3, HID, OUT_DIM)
    return (w1, b1, w2, b2, w3, b3)


if __name__ == "__main__":
    key = jax.random.PRNGKey(0)
    kx, kp = jax.random.split(key)

    batch = 2
    x = jax.random.normal(kx, (batch, COL_CHAN, IMG_HEIGHT, IMG_WIDTH), jnp.float32)
    params = init_params(kp)

    out = mlp_forward(x, params)
    out = jax.block_until_ready(out)

    # Pure-JAX f32 reference (kernel uses bf16 MXU inputs + bf16 writeback -> relaxed tol).
    w1, b1, w2, b2, w3, b3 = params
    xr = x.reshape(batch, IN_DIM)
    ref = jnp.maximum(xr @ w1 + b1, 0.0)
    ref = jnp.maximum(ref @ w2 + b2, 0.0)
    ref = ref @ w3 + b3

    assert out.shape == (batch, OUT_DIM)
    assert jnp.allclose(out, ref, atol=5e-2, rtol=5e-2), \
        f"max abs err {jnp.max(jnp.abs(out - ref))}"

    print("KERNEL_OK")
</pallas_src>

<mosaic_0001>
module attributes {stable_mosaic.version = 11 : i64} {
  func.func @_mlp_kernel(%arg0: i32, %arg1: memref<16x3072xf32, #tpu.memory_space<vmem>>, %arg2: memref<3072x128xbf16, #tpu.memory_space<vmem>>, %arg3: memref<1x128xf32, #tpu.memory_space<vmem>>, %arg4: memref<128x128xbf16, #tpu.memory_space<vmem>>, %arg5: memref<1x128xf32, #tpu.memory_space<vmem>>, %arg6: memref<128x128xbf16, #tpu.memory_space<vmem>>, %arg7: memref<1x128xf32, #tpu.memory_space<vmem>>, %arg8: memref<16x128xbf16, #tpu.memory_space<vmem>>) attributes {dimension_semantics = [#tpu.dimension_semantics<parallel>], iteration_bounds = array<i64: 1>, scalar_prefetch = 0 : i64, scratch_operands = 0 : i64, tpu.core_type = #tpu.core_type<tc>, window_params = [{transform_indices = @transform_0, window_bounds = array<i64: 16, 3072>}, {pipeline_mode = #tpu.pipeline_mode<synchronous>, transform_indices = @transform_1, window_bounds = array<i64: 3072, 128>}, {pipeline_mode = #tpu.pipeline_mode<synchronous>, transform_indices = @transform_2, window_bounds = array<i64: 1, 128>}, {pipeline_mode = #tpu.pipeline_mode<synchronous>, transform_indices = @transform_3, window_bounds = array<i64: 128, 128>}, {pipeline_mode = #tpu.pipeline_mode<synchronous>, transform_indices = @transform_4, window_bounds = array<i64: 1, 128>}, {pipeline_mode = #tpu.pipeline_mode<synchronous>, transform_indices = @transform_5, window_bounds = array<i64: 128, 128>}, {pipeline_mode = #tpu.pipeline_mode<synchronous>, transform_indices = @transform_6, window_bounds = array<i64: 1, 128>}, {transform_indices = @transform_7, window_bounds = array<i64: 16, 128>}]} {
    %c0 = arith.constant 0 : index
    %c0_0 = arith.constant 0 : index
    %0 = vector.load %arg1[%c0, %c0_0] : memref<16x3072xf32, #tpu.memory_space<vmem>>, vector<16x3072xf32>
    %1 = arith.truncf %0 : vector<16x3072xf32> to vector<16x3072xbf16>
    %c0_1 = arith.constant 0 : index
    %c0_2 = arith.constant 0 : index
    %2 = vector.load %arg2[%c0_1, %c0_2] : memref<3072x128xbf16, #tpu.memory_space<vmem>>, vector<3072x128xbf16>
    %cst = arith.constant dense<0.000000e+00> : vector<16x128xf32>
    %3 = tpu.matmul %1, %2, %cst {dimension_numbers = #tpu.dot_dimension_numbers<[1], [0], [0], [1], [0, 0, 1, 1], [], []>} : vector<16x3072xbf16>, vector<3072x128xbf16>, vector<16x128xf32> -> vector<16x128xf32>
    %c0_3 = arith.constant 0 : index
    %c0_4 = arith.constant 0 : index
    %4 = vector.load %arg3[%c0_3, %c0_4] : memref<1x128xf32, #tpu.memory_space<vmem>>, vector<1x128xf32>
    %5 = vector.broadcast %4 : vector<1x128xf32> to vector<16x128xf32>
    %6 = arith.addf %3, %5 : vector<16x128xf32>
    %cst_5 = arith.constant 0.000000e+00 : f32
    %7 = vector.broadcast %cst_5 : f32 to vector<16x128xf32>
    %8 = arith.maximumf %6, %7 : vector<16x128xf32>
    %9 = arith.truncf %8 : vector<16x128xf32> to vector<16x128xbf16>
    %c0_6 = arith.constant 0 : index
    %c0_7 = arith.constant 0 : index
    %10 = vector.load %arg4[%c0_6, %c0_7] : memref<128x128xbf16, #tpu.memory_space<vmem>>, vector<128x128xbf16>
    %cst_8 = arith.constant dense<0.000000e+00> : vector<16x128xf32>
    %11 = tpu.matmul %9, %10, %cst_8 {dimension_numbers = #tpu.dot_dimension_numbers<[1], [0], [0], [1], [0, 0, 1, 1], [], []>} : vector<16x128xbf16>, vector<128x128xbf16>, vector<16x128xf32> -> vector<16x128xf32>
    %c0_9 = arith.constant 0 : index
    %c0_10 = arith.constant 0 : index
    %12 = vector.load %arg5[%c0_9, %c0_10] : memref<1x128xf32, #tpu.memory_space<vmem>>, vector<1x128xf32>
    %13 = vector.broadcast %12 : vector<1x128xf32> to vector<16x128xf32>
    %14 = arith.addf %11, %13 : vector<16x128xf32>
    %cst_11 = arith.constant 0.000000e+00 : f32
    %15 = vector.broadcast %cst_11 : f32 to vector<16x128xf32>
    %16 = arith.maximumf %14, %15 : vector<16x128xf32>
    %17 = arith.truncf %16 : vector<16x128xf32> to vector<16x128xbf16>
    %c0_12 = arith.constant 0 : index
    %c0_13 = arith.constant 0 : index
    %18 = vector.load %arg6[%c0_12, %c0_13] : memref<128x128xbf16, #tpu.memory_space<vmem>>, vector<128x128xbf16>
    %cst_14 = arith.constant dense<0.000000e+00> : vector<16x128xf32>
    %19 = tpu.matmul %17, %18, %cst_14 {dimension_numbers = #tpu.dot_dimension_numbers<[1], [0], [0], [1], [0, 0, 1, 1], [], []>} : vector<16x128xbf16>, vector<128x128xbf16>, vector<16x128xf32> -> vector<16x128xf32>
    %c0_15 = arith.constant 0 : index
    %c0_16 = arith.constant 0 : index
    %20 = vector.load %arg7[%c0_15, %c0_16] : memref<1x128xf32, #tpu.memory_space<vmem>>, vector<1x128xf32>
    %21 = vector.broadcast %20 : vector<1x128xf32> to vector<16x128xf32>
    %22 = arith.addf %19, %21 : vector<16x128xf32>
    %23 = arith.truncf %22 : vector<16x128xf32> to vector<16x128xbf16>
    %c0_17 = arith.constant 0 : index
    %c0_18 = arith.constant 0 : index
    %24 = vector.load %arg8[%c0_17, %c0_18] : memref<16x128xbf16, #tpu.memory_space<vmem>>, vector<16x128xbf16>
    tpu.vector_store %arg8[%c0_17, %c0_18], %23 {strides = array<i32>} : memref<16x128xbf16, #tpu.memory_space<vmem>>, vector<16x128xbf16>,
    return
  }
  func.func @transform_0(%arg0: i32) -> (i32, i32) {
    %c0_i32 = arith.constant 0 : i32
    %c0_i32_0 = arith.constant 0 : i32
    return %arg0, %c0_i32 : i32, i32
  }
  func.func @transform_1(%arg0: i32) -> (i32, i32) {
    %c0_i32 = arith.constant 0 : i32
    %c0_i32_0 = arith.constant 0 : i32
    %c0_i32_1 = arith.constant 0 : i32
    return %c0_i32, %c0_i32_0 : i32, i32
  }
  func.func @transform_2(%arg0: i32) -> (i32, i32) {
    %c0_i32 = arith.constant 0 : i32
    %c0_i32_0 = arith.constant 0 : i32
    %c0_i32_1 = arith.constant 0 : i32
    return %c0_i32, %c0_i32_0 : i32, i32
  }
  func.func @transform_3(%arg0: i32) -> (i32, i32) {
    %c0_i32 = arith.constant 0 : i32
    %c0_i32_0 = arith.constant 0 : i32
    %c0_i32_1 = arith.constant 0 : i32
    return %c0_i32, %c0_i32_0 : i32, i32
  }
  func.func @transform_4(%arg0: i32) -> (i32, i32) {
    %c0_i32 = arith.constant 0 : i32
    %c0_i32_0 = arith.constant 0 : i32
    %c0_i32_1 = arith.constant 0 : i32
    return %c0_i32, %c0_i32_0 : i32, i32
  }
  func.func @transform_5(%arg0: i32) -> (i32, i32) {
    %c0_i32 = arith.constant 0 : i32
    %c0_i32_0 = arith.constant 0 : i32
    %c0_i32_1 = arith.constant 0 : i32
    return %c0_i32, %c0_i32_0 : i32, i32
  }
  func.func @transform_6(%arg0: i32) -> (i32, i32) {
    %c0_i32 = arith.constant 0 : i32
    %c0_i32_0 = arith.constant 0 : i32
    %c0_i32_1 = arith.constant 0 : i32
    return %c0_i32, %c0_i32_0 : i32, i32
  }
  func.func @transform_7(%arg0: i32) -> (i32, i32) {
    %c0_i32 = arith.constant 0 : i32
    %c0_i32_0 = arith.constant 0 : i32
    return %arg0, %c0_i32 : i32, i32
  }
}

</mosaic_0001>

<bundles_post_ra>
// kernel: mlp_forward.1
= control target key start
LH: loop header
LB: loop body
LE: loop exit
PB: predicated region body
PF: predicated region fallthrough
CT: control target
= control target key end

     0   :  { %vm3131_vm0 = vmmov 0   ;;  %s3970_s1 = inlined_call_operand.vmem [shape: bf16[3072,128], index: 1, kind: input, shape index: {}]   ;;  %s3971_s0 = inlined_call_operand.vmem [shape: f32[16,3072], index: 0, kind: input, shape index: {}]   ;;  %s3972_s2 = inlined_call_operand.vmem [shape: f32[1,128], index: 2, kind: input, shape index: {}]   ;;  %s3973_s3 = inlined_call_operand.vmem [shape: bf16[128,128], index: 3, kind: input, shape index: {}]   ;;  %s3974_s5 = inlined_call_operand.vmem [shape: bf16[128,128], index: 5, kind: input, shape index: {}]   ;;  %s3975_s4 = inlined_call_operand.vmem [shape: f32[1,128], index: 4, kind: input, shape index: {}]   ;;  %s3976_s6 = inlined_call_operand.vmem [shape: f32[1,128], index: 6, kind: input, shape index: {}]   ;;  %s3977_s7 = inlined_call_operand.vmem [shape: bf16[16,128], index: 7, kind: output, shape index: {}]  }
   0x1   :  { %v2922_v0 = vld [vmem:[%s3970_s1 + $0x40] sm:$0xff]   ;;  %v2926_v4 = vld [vmem:[%s3970_s1 + $0x48] sm:$0xff]   ;;  %v2930_v8 = vld [vmem:[%s3970_s1 + $0x50] sm:$0xff]  }
   0x2   :  { %v2923_v1 = vld [vmem:[%s3970_s1 + $0xc0] sm:$0xff]   ;;  %2598 = vmatprep.subr.bf16.mxu0 %v2922_v0  ;;  %v2927_v5 = vld [vmem:[%s3970_s1 + $0xc8] sm:$0xff]   ;;  %v2931_v9 = vld [vmem:[%s3970_s1 + $0xd0] sm:$0xff]  }
   0x3   :  { %v2924_v2 = vld [vmem:[%s3970_s1] sm:$0xff]   ;;  %2620 = vmatprep.subr.bf16.mxu1 %v2923_v1  ;;  %v2928_v6 = vld [vmem:[%s3970_s1 + $0x8] sm:$0xff]   ;;  %v2932_v10 = vld [vmem:[%s3970_s1 + $0x10] sm:$0xff]  }
   0x4   :  { %v2925_v3 = vld [vmem:[%s3970_s1 + $0x80] sm:$0xff]   ;;  %2599 = vmatpush3.bf16.msra.mxu0 %v2924_v2  ;;  %v2929_v7 = vld [vmem:[%s3970_s1 + $0x88] sm:$0xff]   ;;  %v2933_v11 = vld [vmem:[%s3970_s1 + $0x90] sm:$0xff]  }
   0x5   :  { %2621 = vmatpush3.bf16.msra.mxu1 %v2925_v3  ;;  %2600 = vmatprep.subr.bf16.mxu0 %v2926_v4  ;;  %v2934_v12 = vld [vmem:[%s3970_s1 + $0x58] sm:$0xff]   ;;  %v2938_v16 = vld [vmem:[%s3970_s1 + $0x60] sm:$0xff]   ;;  %v2942_v20 = vld [vmem:[%s3970_s1 + $0x68] sm:$0xff]  }
   0x6   :  { %2622 = vmatprep.subr.bf16.mxu1 %v2927_v5  ;;  %v2935_v13 = vld [vmem:[%s3970_s1 + $0xd8] sm:$0xff]   ;;  %v2939_v17 = vld [vmem:[%s3970_s1 + $0xe0] sm:$0xff]   ;;  %v2943_v21 = vld [vmem:[%s3970_s1 + $0xe8] sm:$0xff]  }
   0x7   :  { %v2936_v14 = vld [vmem:[%s3970_s1 + $0x18] sm:$0xff]   ;;  %v2940_v18 = vld [vmem:[%s3970_s1 + $0x20] sm:$0xff]   ;;  %v2944_v22 = vld [vmem:[%s3970_s1 + $0x28] sm:$0xff]  }
   0x8   :  { %2601 = vmatpush3.bf16.msra.mxu0 %v2928_v6  ;;  %v2937_v15 = vld [vmem:[%s3970_s1 + $0x98] sm:$0xff]   ;;  %v2941_v19 = vld [vmem:[%s3970_s1 + $0xa0] sm:$0xff]   ;;  %v2945_v23 = vld [vmem:[%s3970_s1 + $0xa8] sm:$0xff]  }
   0x9   :  { %2623 = vmatpush3.bf16.msra.mxu1 %v2929_v7  ;;  %2602 = vmatprep.subr.bf16.mxu0 %v2930_v8  ;;  %v2946_v24 = vld [vmem:[%s3970_s1 + $0x70] sm:$0xff]   ;;  %v2950_v28 = vld [vmem:[%s3970_s1 + $0x78] sm:$0xff]   ;;  %v28_v32 = vld [vmem:[%s3971_s0 + $0x8] sm:$0xff] }
   0xa   :  { %2624 = vmatprep.subr.bf16.mxu1 %v2931_v9  ;;  %v2947_v25 = vld [vmem:[%s3970_s1 + $0xf0] sm:$0xff]   ;;  %v2951_v29 = vld [vmem:[%s3970_s1 + $0xf8] sm:$0xff]   ;;  %v52_v33 = vld [vmem:[%s3971_s0 + $0xc8] sm:$0xff] }
   0xb   :  { %v2948_v26 = vld [vmem:[%s3970_s1 + $0x30] sm:$0xff]   ;;  %v2952_v30 = vld [vmem:[%s3970_s1 + $0x38] sm:$0xff]   ;;  %v76_v35 = vpack.c.bf16 %v52_v33, %v28_v32  ;;  %v27_v37 = vld [vmem:[%s3971_s0] sm:$0xff] }
   0xc   :  { %2603 = vmatpush3.bf16.msra.mxu0 %v2932_v10  ;;  %v2949_v27 = vld [vmem:[%s3970_s1 + $0xb0] sm:$0xff]   ;;  %v2953_v31 = vld [vmem:[%s3970_s1 + $0xb8] sm:$0xff]   ;;  %v51_v38 = vld [vmem:[%s3971_s0 + $0xc0] sm:$0xff] }
   0xd   :  { %2625 = vmatpush3.bf16.msra.mxu1 %v2933_v11  ;;  %2604 = vmatprep.subr.bf16.mxu0 %v2934_v12  ;;  %v30_v34 = vld [vmem:[%s3971_s0 + $0x18] sm:$0xff]  ;;  %v75_v40 = vpack.c.bf16 %v51_v38, %v27_v37  ;;  %v29_v41 = vld [vmem:[%s3971_s0 + $0x10] sm:$0xff]  ;;  %v2954_v44 = vld [vmem:[%s3970_s1 + $0x140] sm:$0xff]  }
   0xe   :  { %2626 = vmatprep.subr.bf16.mxu1 %v2935_v13  ;;  %v54_v36 = vld [vmem:[%s3971_s0 + $0xd8] sm:$0xff]  ;;  %v53_v42 = vld [vmem:[%s3971_s0 + $0xd0] sm:$0xff]  ;;  %1674 = vmatprep.mubr.bf16.mxu0 %v76_v35  ;;  %v2955_v45 = vld [vmem:[%s3970_s1 + $0x1c0] sm:$0xff]  }
   0xf   :  { %v78_v39 = vpack.c.bf16 %v54_v36, %v30_v34  ;;  %v77_v43 = vpack.c.bf16 %v53_v42, %v29_v41  ;;  %v2956_v46 = vld [vmem:[%s3970_s1 + $0x100] sm:$0xff]   ;;  %v2958_v48 = vld [vmem:[%s3970_s1 + $0x148] sm:$0xff]   ;;  %v2962_v52 = vld [vmem:[%s3970_s1 + $0x150] sm:$0xff]  }
  0x10   :  { %2605 = vmatpush3.bf16.msra.mxu0 %v2936_v14  ;;  %v2957_v47 = vld [vmem:[%s3970_s1 + $0x180] sm:$0xff]   ;;  %v2959_v49 = vld [vmem:[%s3970_s1 + $0x1c8] sm:$0xff]   ;;  %v2963_v53 = vld [vmem:[%s3970_s1 + $0x1d0] sm:$0xff]  }
  0x11   :  { %2627 = vmatpush3.bf16.msra.mxu1 %v2937_v15  ;;  %2606 = vmatprep.subr.bf16.mxu0 %v2938_v16  ;;  %v2960_v50 = vld [vmem:[%s3970_s1 + $0x108] sm:$0xff]   ;;  %v2964_v54 = vld [vmem:[%s3970_s1 + $0x110] sm:$0xff]   ;;  %v2966_v56 = vld [vmem:[%s3970_s1 + $0x158] sm:$0xff]  }
  0x12   :  { %2628 = vmatprep.subr.bf16.mxu1 %v2939_v17  ;;  %1715 = vmatprep.mubr.bf16.mxu1 %v78_v39  ;;  %v2961_v51 = vld [vmem:[%s3970_s1 + $0x188] sm:$0xff]   ;;  %v2965_v55 = vld [vmem:[%s3970_s1 + $0x190] sm:$0xff]   ;;  %v2967_v57 = vld [vmem:[%s3970_s1 + $0x1d8] sm:$0xff]  }
  0x13   :  { %v2968_v58 = vld [vmem:[%s3970_s1 + $0x118] sm:$0xff]   ;;  %v2970_v60 = vld [vmem:[%s3970_s1 + $0x160] sm:$0xff]   ;;  %v2974_v0 = vld [vmem:[%s3970_s1 + $0x168] sm:$0xff]  }
  0x14   :  { %2607 = vmatpush3.bf16.msra.mxu0 %v2940_v18  ;;  %v2969_v59 = vld [vmem:[%s3970_s1 + $0x198] sm:$0xff]   ;;  %v2971_v61 = vld [vmem:[%s3970_s1 + $0x1e0] sm:$0xff]   ;;  %v2975_v1 = vld [vmem:[%s3970_s1 + $0x1e8] sm:$0xff]  }
  0x15   :  { %2629 = vmatpush3.bf16.msra.mxu1 %v2941_v19  ;;  %2608 = vmatprep.subr.bf16.mxu0 %v2942_v20  ;;  %v2972_v62 = vld [vmem:[%s3970_s1 + $0x120] sm:$0xff]   ;;  %v2976_v2 = vld [vmem:[%s3970_s1 + $0x128] sm:$0xff]   ;;  %v2978_v4 = vld [vmem:[%s3970_s1 + $0x170] sm:$0xff]  }
  0x16   :  { %2630 = vmatprep.subr.bf16.mxu1 %v2943_v21  ;;  %v2973_v63 = vld [vmem:[%s3970_s1 + $0x1a0] sm:$0xff]   ;;  %v2977_v3 = vld [vmem:[%s3970_s1 + $0x1a8] sm:$0xff]   ;;  %v2979_v5 = vld [vmem:[%s3970_s1 + $0x1f0] sm:$0xff]  }
  0x17   :  { %v2980_v6 = vld [vmem:[%s3970_s1 + $0x130] sm:$0xff]   ;;  %v2982_v8 = vld [vmem:[%s3970_s1 + $0x178] sm:$0xff]   ;;  %v32_v12 = vld [vmem:[%s3971_s0 + $0x28] sm:$0xff] }
  0x18   :  { %2609 = vmatpush3.bf16.msra.mxu0 %v2944_v22  ;;  %v2981_v7 = vld [vmem:[%s3970_s1 + $0x1b0] sm:$0xff]   ;;  %v2983_v9 = vld [vmem:[%s3970_s1 + $0x1f8] sm:$0xff]   ;;  %v56_v13 = vld [vmem:[%s3971_s0 + $0xe8] sm:$0xff] }
  0x19   :  { %2631 = vmatpush3.bf16.msra.mxu1 %v2945_v23  ;;  %2610 = vmatprep.subr.bf16.mxu0 %v2946_v24  ;;  %v2984_v10 = vld [vmem:[%s3970_s1 + $0x138] sm:$0xff]   ;;  %v80_v16 = vpack.c.bf16 %v56_v13, %v32_v12  ;;  %v31_v18 = vld [vmem:[%s3971_s0 + $0x20] sm:$0xff]  ;;  %v33_v20 = vld [vmem:[%s3971_s0 + $0x30] sm:$0xff] }
  0x1a   :  { %2632 = vmatprep.subr.bf16.mxu1 %v2947_v25  ;;  %v2985_v11 = vld [vmem:[%s3970_s1 + $0x1b8] sm:$0xff]   ;;  %v55_v19 = vld [vmem:[%s3971_s0 + $0xe0] sm:$0xff]  ;;  %v57_v22 = vld [vmem:[%s3971_s0 + $0xf0] sm:$0xff] }
  0x1b   :  { %v34_v14 = vld [vmem:[%s3971_s0 + $0x38] sm:$0xff]  ;;  %v79_v21 = vpack.c.bf16 %v55_v19, %v31_v18  ;;  %v81_v23 = vpack.c.bf16 %v57_v22, %v33_v20  ;;  %v2986_v24 = vld [vmem:[%s3970_s1 + $0x240] sm:$0xff]   ;;  %v2994_v32 = vld [vmem:[%s3970_s1 + $0x250] sm:$0xff]  }
  0x1c   :  { %2611 = vmatpush3.bf16.msra.mxu0 %v2948_v26  ;;  %v58_v15 = vld [vmem:[%s3971_s0 + $0xf8] sm:$0xff]  ;;  %v2987_v25 = vld [vmem:[%s3970_s1 + $0x2c0] sm:$0xff]   ;;  %v2995_v33 = vld [vmem:[%s3970_s1 + $0x2d0] sm:$0xff]  }
  0x1d   :  { %2633 = vmatpush3.bf16.msra.mxu1 %v2949_v27  ;;  %2612 = vmatprep.subr.bf16.mxu0 %v2950_v28  ;;  %v82_v17 = vpack.c.bf16 %v58_v15, %v34_v14  ;;  %v2988_v26 = vld [vmem:[%s3970_s1 + $0x200] sm:$0xff]   ;;  %v2990_v28 = vld [vmem:[%s3970_s1 + $0x248] sm:$0xff]   ;;  %v2996_v34 = vld [vmem:[%s3970_s1 + $0x210] sm:$0xff]  }
  0x1e   :  { %2634 = vmatprep.subr.bf16.mxu1 %v2951_v29  ;;  %v2989_v27 = vld [vmem:[%s3970_s1 + $0x280] sm:$0xff]   ;;  %v2991_v29 = vld [vmem:[%s3970_s1 + $0x2c8] sm:$0xff]   ;;  %v2997_v35 = vld [vmem:[%s3970_s1 + $0x290] sm:$0xff]  }
  0x1f   :  { %v2998_v36 = vld [vmem:[%s3970_s1 + $0x258] sm:$0xff]   ;;  %v3003_v41 = vld [vmem:[%s3970_s1 + $0x2e0] sm:$0xff]   ;;  %v3026_v12 = vld [vmem:[%s3970_s1 + $0x350] sm:$0xff]  }
  0x20   :  { %2613 = vmatpush3.bf16.msra.mxu0 %v2952_v30  ;;  %v2992_v30 = vld [vmem:[%s3970_s1 + $0x208] sm:$0xff]   ;;  %v2999_v37 = vld [vmem:[%s3970_s1 + $0x2d8] sm:$0xff]   ;;  %v3004_v42 = vld [vmem:[%s3970_s1 + $0x220] sm:$0xff]  }
  0x21   :  { %2635 = vmatpush3.bf16.msra.mxu1 %v2953_v31  ;;  %2642 = vmatprep.subr.bf16.mxu0 %v2954_v44  ;;  %v2993_v31 = vld [vmem:[%s3970_s1 + $0x288] sm:$0xff]   ;;  %v3000_v38 = vld [vmem:[%s3970_s1 + $0x218] sm:$0xff]   ;;  %v3027_v13 = vld [vmem:[%s3970_s1 + $0x3d0] sm:$0xff]  }
  0x22   :  { %2664 = vmatprep.subr.bf16.mxu1 %v2955_v45  ;;  %v3001_v39 = vld [vmem:[%s3970_s1 + $0x298] sm:$0xff]   ;;  %v3006_v44 = vld [vmem:[%s3970_s1 + $0x268] sm:$0xff]   ;;  %v3028_v14 = vld [vmem:[%s3970_s1 + $0x310] sm:$0xff]  }
  0x23   :  { %1675 = vmatmul.mubr.bf16.vlgmr.msra.gmra.mrb[0].mxu0 %v75_v40  ;;  %v3002_v40 = vld [vmem:[%s3970_s1 + $0x260] sm:$0xff]   ;;  %v3007_v45 = vld [vmem:[%s3970_s1 + $0x2e8] sm:$0xff]   ;;  %v3029_v15 = vld [vmem:[%s3970_s1 + $0x390] sm:$0xff]  }
  0x24   :  { %1716 = vmatmul.mubr.bf16.vlgmr.msra.gmra.mrb[0].mxu1 %v77_v43  ;;  %2643 = vmatpush3.bf16.msra.mxu0 %v2956_v46  ;;  %v3005_v43 = vld [vmem:[%s3970_s1 + $0x2a0] sm:$0xff]   ;;  %v3008_v46 = vld [vmem:[%s3970_s1 + $0x228] sm:$0xff]   ;;  %v3032_v18 = vld [vmem:[%s3970_s1 + $0x318] sm:$0xff]  }
  0x25   :  { %2665 = vmatpush3.bf16.msra.mxu1 %v2957_v47  ;;  %2644 = vmatprep.subr.bf16.mxu0 %v2958_v48  ;;  %v3009_v47 = vld [vmem:[%s3970_s1 + $0x2a8] sm:$0xff]   ;;  %v3010_v48 = vld [vmem:[%s3970_s1 + $0x270] sm:$0xff]   ;;  %v3033_v19 = vld [vmem:[%s3970_s1 + $0x398] sm:$0xff]  }
  0x26   :  { %2666 = vmatprep.subr.bf16.mxu1 %v2959_v49  ;;  %1756 = vmatprep.mubr.bf16.mxu0 %v80_v16  ;;  %v3011_v49 = vld [vmem:[%s3970_s1 + $0x2f0] sm:$0xff]   ;;  %v3030_v16 = vld [vmem:[%s3970_s1 + $0x358] sm:$0xff]   ;;  %v3034_v20 = vld [vmem:[%s3970_s1 + $0x360] sm:$0xff]  }
  0x27   :  { %1797 = vmatprep.mubr.bf16.mxu1 %v82_v17  ;;  %v3031_v17 = vld [vmem:[%s3970_s1 + $0x3d8] sm:$0xff]   ;;  %v3036_v22 = vld [vmem:[%s3970_s1 + $0x320] sm:$0xff]  }
  0x28   :  { %2645 = vmatpush3.bf16.msra.mxu0 %v2960_v50  ;;  %v3012_v50 = vld [vmem:[%s3970_s1 + $0x230] sm:$0xff]  }
  0x29   :  { %2667 = vmatpush3.bf16.msra.mxu1 %v2961_v51  ;;  %2646 = vmatprep.subr.bf16.mxu0 %v2962_v52  ;;  %v3013_v51 = vld [vmem:[%s3970_s1 + $0x2b0] sm:$0xff]   ;;  %v3014_v52 = vld [vmem:[%s3970_s1 + $0x278] sm:$0xff]  }
  0x2a   :  { %2668 = vmatprep.subr.bf16.mxu1 %v2963_v53  ;;  %v3015_v53 = vld [vmem:[%s3970_s1 + $0x2f8] sm:$0xff]  }
  0x2c   :  { %2647 = vmatpush3.bf16.msra.mxu0 %v2964_v54  ;;  %v3016_v54 = vld [vmem:[%s3970_s1 + $0x238] sm:$0xff]  }
  0x2d   :  { %2669 = vmatpush3.bf16.msra.mxu1 %v2965_v55  ;;  %2648 = vmatprep.subr.bf16.mxu0 %v2966_v56  ;;  %v3017_v55 = vld [vmem:[%s3970_s1 + $0x2b8] sm:$0xff]   ;;  %v36_v56 = vld [vmem:[%s3971_s0 + $0x48] sm:$0xff] }
  0x2e   :  { %2670 = vmatprep.subr.bf16.mxu1 %v2967_v57  ;;  %v60_v57 = vld [vmem:[%s3971_s0 + $0x108] sm:$0xff] }
  0x30   :  { %2649 = vmatpush3.bf16.msra.mxu0 %v2968_v58  ;;  %v84_v58 = vpack.c.bf16 %v60_v57, %v36_v56  ;;  %v3058_v56 = vld [vmem:[%s3970_s1 + $0x450] sm:$0xff]  }
  0x31   :  { %2671 = vmatpush3.bf16.msra.mxu1 %v2969_v59  ;;  %2650 = vmatprep.subr.bf16.mxu0 %v2970_v60  ;;  %v38_v59 = vld [vmem:[%s3971_s0 + $0x58] sm:$0xff]  ;;  %v3059_v57 = vld [vmem:[%s3970_s1 + $0x4d0] sm:$0xff]  }
  0x32   :  { %2672 = vmatprep.subr.bf16.mxu1 %v2971_v61  ;;  %v62_v60 = vld [vmem:[%s3971_s0 + $0x118] sm:$0xff]  ;;  %v35_v61 = vld [vmem:[%s3971_s0 + $0x40] sm:$0xff] }
  0x34   :  { %2651 = vmatpush3.bf16.msra.mxu0 %v2972_v62  ;;  %v86_v62 = vpack.c.bf16 %v62_v60, %v38_v59  ;;  %v3061_v59 = vld [vmem:[%s3970_s1 + $0x490] sm:$0xff]   ;;  %v3062_v60 = vld [vmem:[%s3970_s1 + $0x458] sm:$0xff]  }
  0x35   :  { %2673 = vmatpush3.bf16.msra.mxu1 %v2973_v63  ;;  %2652 = vmatprep.subr.bf16.mxu0 %v2974_v0  ;;  %v59_v63 = vld [vmem:[%s3971_s0 + $0x100] sm:$0xff]  ;;  %v37_v0 = vld [vmem:[%s3971_s0 + $0x50] sm:$0xff] }
  0x36   :  { %2674 = vmatprep.subr.bf16.mxu1 %v2975_v1  ;;  %v61_v1 = vld [vmem:[%s3971_s0 + $0x110] sm:$0xff] }
  0x38   :  { %2653 = vmatpush3.bf16.msra.mxu0 %v2976_v2  ;;  %v83_v2 = vpack.c.bf16 %v59_v63, %v35_v61  ;;  %v3063_v61 = vld [vmem:[%s3970_s1 + $0x4d8] sm:$0xff]  }
  0x39   :  { %2675 = vmatpush3.bf16.msra.mxu1 %v2977_v3  ;;  %2654 = vmatprep.subr.bf16.mxu0 %v2978_v4  ;;  %v85_v3 = vpack.c.bf16 %v61_v1, %v37_v0  ;;  %v3018_v4 = vld [vmem:[%s3970_s1 + $0x340] sm:$0xff]   ;;  %v3065_v63 = vld [vmem:[%s3970_s1 + $0x498] sm:$0xff]  }
  0x3a   :  { %2676 = vmatprep.subr.bf16.mxu1 %v2979_v5  ;;  %v3019_v5 = vld [vmem:[%s3970_s1 + $0x3c0] sm:$0xff]  }
  0x3b   :  { %v3066_v0 = vld [vmem:[%s3970_s1 + $0x460] sm:$0xff]  }
  0x3c   :  { %2655 = vmatpush3.bf16.msra.mxu0 %v2980_v6  ;;  %v3020_v6 = vld [vmem:[%s3970_s1 + $0x300] sm:$0xff]  }
  0x3d   :  { %2677 = vmatpush3.bf16.msra.mxu1 %v2981_v7  ;;  %2656 = vmatprep.subr.bf16.mxu0 %v2982_v8  ;;  %v3021_v7 = vld [vmem:[%s3970_s1 + $0x380] sm:$0xff]   ;;  %v3022_v8 = vld [vmem:[%s3970_s1 + $0x348] sm:$0xff]  }
  0x3e   :  { %2678 = vmatprep.subr.bf16.mxu1 %v2983_v9  ;;  %v3023_v9 = vld [vmem:[%s3970_s1 + $0x3c8] sm:$0xff]   ;;  %v3067_v1 = vld [vmem:[%s3970_s1 + $0x4e0] sm:$0xff]  }
  0x40   :  { %2657 = vmatpush3.bf16.msra.mxu0 %v2984_v10  ;;  %v3024_v10 = vld [vmem:[%s3970_s1 + $0x308] sm:$0xff]  }
  0x41   :  { %2679 = vmatpush3.bf16.msra.mxu1 %v2985_v11  ;;  %2686 = vmatprep.subr.bf16.mxu0 %v2986_v24  ;;  %v3025_v11 = vld [vmem:[%s3970_s1 + $0x388] sm:$0xff]  }
  0x42   :  { %2708 = vmatprep.subr.bf16.mxu1 %v2987_v25  ;;  %v3038_v24 = vld [vmem:[%s3970_s1 + $0x368] sm:$0xff]  }
  0x43   :  { %1757 = vmatmul.mubr.bf16.vlgmr.msra.gmra.mrb[4].mxu0 %v79_v21  ;;  %v3035_v21 = vld [vmem:[%s3970_s1 + $0x3e0] sm:$0xff]   ;;  %v3039_v25 = vld [vmem:[%s3970_s1 + $0x3e8] sm:$0xff]  }
  0x44   :  { %1798 = vmatmul.mubr.bf16.vlgmr.msra.gmra.mrb[4].mxu1 %v81_v23  ;;  %2687 = vmatpush3.bf16.msra.mxu0 %v2988_v26  ;;  %v3037_v23 = vld [vmem:[%s3970_s1 + $0x3a0] sm:$0xff]   ;;  %v3040_v26 = vld [vmem:[%s3970_s1 + $0x328] sm:$0xff]  }
  0x45   :  { %2709 = vmatpush3.bf16.msra.mxu1 %v2989_v27  ;;  %2688 = vmatprep.subr.bf16.mxu0 %v2990_v28  ;;  %v3041_v27 = vld [vmem:[%s3970_s1 + $0x3a8] sm:$0xff]   ;;  %v3042_v28 = vld [vmem:[%s3970_s1 + $0x370] sm:$0xff]  }
  0x46   :  { %2710 = vmatprep.subr.bf16.mxu1 %v2991_v29  ;;  %1838 = vmatprep.mubr.bf16.mxu0 %v84_v58  ;;  %v3043_v29 = vld [vmem:[%s3970_s1 + $0x3f0] sm:$0xff]  }
  0x47   :  { %1879 = vmatprep.mubr.bf16.mxu1 %v86_v62  ;;  %v3060_v58 = vld [vmem:[%s3970_s1 + $0x410] sm:$0xff]   ;;  %v3064_v62 = vld [vmem:[%s3970_s1 + $0x418] sm:$0xff]  }
  0x48   :  { %2689 = vmatpush3.bf16.msra.mxu0 %v2992_v30  ;;  %v3044_v30 = vld [vmem:[%s3970_s1 + $0x330] sm:$0xff]  }
  0x49   :  { %2711 = vmatpush3.bf16.msra.mxu1 %v2993_v31  ;;  %2690 = vmatprep.subr.bf16.mxu0 %v2994_v32  ;;  %v3045_v31 = vld [vmem:[%s3970_s1 + $0x3b0] sm:$0xff]   ;;  %v3046_v32 = vld [vmem:[%s3970_s1 + $0x378] sm:$0xff]  }
  0x4a   :  { %2712 = vmatprep.subr.bf16.mxu1 %v2995_v33  ;;  %v3047_v33 = vld [vmem:[%s3970_s1 + $0x3f8] sm:$0xff]  }
  0x4c   :  { %2691 = vmatpush3.bf16.msra.mxu0 %v2996_v34  ;;  %v3048_v34 = vld [vmem:[%s3970_s1 + $0x338] sm:$0xff]  }
  0x4d   :  { %2713 = vmatpush3.bf16.msra.mxu1 %v2997_v35  ;;  %2692 = vmatprep.subr.bf16.mxu0 %v2998_v36  ;;  %v3049_v35 = vld [vmem:[%s3970_s1 + $0x3b8] sm:$0xff]   ;;  %v40_v36 = vld [vmem:[%s3971_s0 + $0x68] sm:$0xff] }
  0x4e   :  { %2714 = vmatprep.subr.bf16.mxu1 %v2999_v37  ;;  %v64_v37 = vld [vmem:[%s3971_s0 + $0x128] sm:$0xff] }
  0x50   :  { %2693 = vmatpush3.bf16.msra.mxu0 %v3000_v38  ;;  %v42_v38 = vld [vmem:[%s3971_s0 + $0x78] sm:$0xff] }
  0x51   :  { %2715 = vmatpush3.bf16.msra.mxu1 %v3001_v39  ;;  %2694 = vmatprep.subr.bf16.mxu0 %v3002_v40  ;;  %v88_v39 = vpack.c.bf16 %v64_v37, %v40_v36  ;;  %v66_v40 = vld [vmem:[%s3971_s0 + $0x138] sm:$0xff]  ;;  %v3090_v36 = vld [vmem:[%s3970_s1 + $0x550] sm:$0xff]  }
  0x52   :  { %2716 = vmatprep.subr.bf16.mxu1 %v3003_v41  ;;  %v39_v41 = vld [vmem:[%s3971_s0 + $0x60] sm:$0xff]  ;;  %v3091_v37 = vld [vmem:[%s3970_s1 + $0x5d0] sm:$0xff]  }
  0x54   :  { %2695 = vmatpush3.bf16.msra.mxu0 %v3004_v42  ;;  %v63_v42 = vld [vmem:[%s3971_s0 + $0x120] sm:$0xff] }
  0x55   :  { %2717 = vmatpush3.bf16.msra.mxu1 %v3005_v43  ;;  %2696 = vmatprep.subr.bf16.mxu0 %v3006_v44  ;;  %v90_v43 = vpack.c.bf16 %v66_v40, %v42_v38  ;;  %v87_v44 = vpack.c.bf16 %v63_v42, %v39_v41  ;;  %v3092_v38 = vld [vmem:[%s3970_s1 + $0x510] sm:$0xff]   ;;  %v3094_v40 = vld [vmem:[%s3970_s1 + $0x558] sm:$0xff]  }
  0x56   :  { %2718 = vmatprep.subr.bf16.mxu1 %v3007_v45  ;;  %v41_v45 = vld [vmem:[%s3971_s0 + $0x70] sm:$0xff]  ;;  %v3095_v41 = vld [vmem:[%s3970_s1 + $0x5d8] sm:$0xff]  }
  0x57   :  { %v3096_v42 = vld [vmem:[%s3970_s1 + $0x518] sm:$0xff]  }
  0x58   :  { %2697 = vmatpush3.bf16.msra.mxu0 %v3008_v46  ;;  %v65_v46 = vld [vmem:[%s3971_s0 + $0x130] sm:$0xff] }
  0x59   :  { %2719 = vmatpush3.bf16.msra.mxu1 %v3009_v47  ;;  %2698 = vmatprep.subr.bf16.mxu0 %v3010_v48  ;;  %v89_v47 = vpack.c.bf16 %v65_v46, %v41_v45  ;;  %v3050_v48 = vld [vmem:[%s3970_s1 + $0x440] sm:$0xff]  }
  0x5a   :  { %2720 = vmatprep.subr.bf16.mxu1 %v3011_v49  ;;  %v3051_v49 = vld [vmem:[%s3970_s1 + $0x4c0] sm:$0xff]  }
  0x5b   :  { %v3099_v45 = vld [vmem:[%s3970_s1 + $0x5e0] sm:$0xff]  }
  0x5c   :  { %2699 = vmatpush3.bf16.msra.mxu0 %v3012_v50  ;;  %v3052_v50 = vld [vmem:[%s3970_s1 + $0x400] sm:$0xff]  }
  0x5d   :  { %2721 = vmatpush3.bf16.msra.mxu1 %v3013_v51  ;;  %2700 = vmatprep.subr.bf16.mxu0 %v3014_v52  ;;  %v3053_v51 = vld [vmem:[%s3970_s1 + $0x480] sm:$0xff]   ;;  %v3054_v52 = vld [vmem:[%s3970_s1 + $0x448] sm:$0xff]  }
  0x5e   :  { %2722 = vmatprep.subr.bf16.mxu1 %v3015_v53  ;;  %v3055_v53 = vld [vmem:[%s3970_s1 + $0x4c8] sm:$0xff]   ;;  %v3100_v46 = vld [vmem:[%s3970_s1 + $0x520] sm:$0xff]  }
  0x60   :  { %2701 = vmatpush3.bf16.msra.mxu0 %v3016_v54  ;;  %v3056_v54 = vld [vmem:[%s3970_s1 + $0x408] sm:$0xff]  }
  0x61   :  { %2723 = vmatpush3.bf16.msra.mxu1 %v3017_v55  ;;  %2730 = vmatprep.subr.bf16.mxu0 %v3018_v4  ;;  %v3057_v55 = vld [vmem:[%s3970_s1 + $0x488] sm:$0xff]  }
  0x62   :  { %2752 = vmatprep.subr.bf16.mxu1 %v3019_v5  ;;  %v3070_v4 = vld [vmem:[%s3970_s1 + $0x468] sm:$0xff]  }
  0x63   :  { %1839 = vmatmul.mubr.bf16.vlgmr.msra.gmra.mrb[8].mxu0 %v83_v2  ;;  %v3068_v2 = vld [vmem:[%s3970_s1 + $0x420] sm:$0xff]   ;;  %v3071_v5 = vld [vmem:[%s3970_s1 + $0x4e8] sm:$0xff]  }
  0x64   :  { %1880 = vmatmul.mubr.bf16.vlgmr.msra.gmra.mrb[8].mxu1 %v85_v3  ;;  %2731 = vmatpush3.bf16.msra.mxu0 %v3020_v6  ;;  %v3069_v3 = vld [vmem:[%s3970_s1 + $0x4a0] sm:$0xff]   ;;  %v3072_v6 = vld [vmem:[%s3970_s1 + $0x428] sm:$0xff]  }
  0x65   :  { %2753 = vmatpush3.bf16.msra.mxu1 %v3021_v7  ;;  %2732 = vmatprep.subr.bf16.mxu0 %v3022_v8  ;;  %v3073_v7 = vld [vmem:[%s3970_s1 + $0x4a8] sm:$0xff]   ;;  %v3074_v8 = vld [vmem:[%s3970_s1 + $0x470] sm:$0xff]  }
  0x66   :  { %2754 = vmatprep.subr.bf16.mxu1 %v3023_v9  ;;  %1920 = vmatprep.mubr.bf16.mxu0 %v88_v39  ;;  %v3075_v9 = vld [vmem:[%s3970_s1 + $0x4f0] sm:$0xff]  }
  0x67   :  { %1961 = vmatprep.mubr.bf16.mxu1 %v90_v43  ;;  %v3093_v39 = vld [vmem:[%s3970_s1 + $0x590] sm:$0xff]   ;;  %v3097_v43 = vld [vmem:[%s3970_s1 + $0x598] sm:$0xff]  }
  0x68   :  { %2733 = vmatpush3.bf16.msra.mxu0 %v3024_v10  ;;  %v3076_v10 = vld [vmem:[%s3970_s1 + $0x430] sm:$0xff]  }
  0x69   :  { %2755 = vmatpush3.bf16.msra.mxu1 %v3025_v11  ;;  %2734 = vmatprep.subr.bf16.mxu0 %v3026_v12  ;;  %v3077_v11 = vld [vmem:[%s3970_s1 + $0x4b0] sm:$0xff]   ;;  %v3078_v12 = vld [vmem:[%s3970_s1 + $0x478] sm:$0xff]  }
  0x6a   :  { %2756 = vmatprep.subr.bf16.mxu1 %v3027_v13  ;;  %v3079_v13 = vld [vmem:[%s3970_s1 + $0x4f8] sm:$0xff]  }
  0x6c   :  { %2735 = vmatpush3.bf16.msra.mxu0 %v3028_v14  ;;  %v3080_v14 = vld [vmem:[%s3970_s1 + $0x438] sm:$0xff]  }
  0x6d   :  { %2757 = vmatpush3.bf16.msra.mxu1 %v3029_v15  ;;  %2736 = vmatprep.subr.bf16.mxu0 %v3030_v16  ;;  %v3081_v15 = vld [vmem:[%s3970_s1 + $0x4b8] sm:$0xff]   ;;  %v44_v16 = vld [vmem:[%s3971_s0 + $0x88] sm:$0xff] }
  0x6e   :  { %2758 = vmatprep.subr.bf16.mxu1 %v3031_v17  ;;  %v68_v17 = vld [vmem:[%s3971_s0 + $0x148] sm:$0xff] }
  0x70   :  { %2737 = vmatpush3.bf16.msra.mxu0 %v3032_v18  ;;  %v46_v18 = vld [vmem:[%s3971_s0 + $0x98] sm:$0xff] }
  0x71   :  { %2759 = vmatpush3.bf16.msra.mxu1 %v3033_v19  ;;  %2738 = vmatprep.subr.bf16.mxu0 %v3034_v20  ;;  %v70_v19 = vld [vmem:[%s3971_s0 + $0x158] sm:$0xff]  ;;  %v92_v20 = vpack.c.bf16 %v68_v17, %v44_v16 }
  0x72   :  { %2760 = vmatprep.subr.bf16.mxu1 %v3035_v21  ;;  %v94_v21 = vpack.c.bf16 %v70_v19, %v46_v18 }
  0x74   :  { %2739 = vmatpush3.bf16.msra.mxu0 %v3036_v22  ;;  %v43_v22 = vld [vmem:[%s3971_s0 + $0x80] sm:$0xff] }
  0x75   :  { %2761 = vmatpush3.bf16.msra.mxu1 %v3037_v23  ;;  %2740 = vmatprep.subr.bf16.mxu0 %v3038_v24  ;;  %v67_v23 = vld [vmem:[%s3971_s0 + $0x140] sm:$0xff]  ;;  %v45_v24 = vld [vmem:[%s3971_s0 + $0x90] sm:$0xff] }
  0x76   :  { %2762 = vmatprep.subr.bf16.mxu1 %v3039_v25  ;;  %v91_v25 = vpack.c.bf16 %v67_v23, %v43_v22 }
  0x78   :  { %2741 = vmatpush3.bf16.msra.mxu0 %v3040_v26  ;;  %v69_v26 = vld [vmem:[%s3971_s0 + $0x150] sm:$0xff] }
  0x79   :  { %2763 = vmatpush3.bf16.msra.mxu1 %v3041_v27  ;;  %2742 = vmatprep.subr.bf16.mxu0 %v3042_v28  ;;  %v93_v27 = vpack.c.bf16 %v69_v26, %v45_v24  ;;  %v3082_v28 = vld [vmem:[%s3970_s1 + $0x540] sm:$0xff]  }
  0x7a   :  { %2764 = vmatprep.subr.bf16.mxu1 %v3043_v29  ;;  %v3083_v29 = vld [vmem:[%s3970_s1 + $0x5c0] sm:$0xff]  }
  0x7b   :  { %v3114_v26 = vld [vmem:[%s3973_s3] sm:$0xff]  }
  0x7c   :  { %2743 = vmatpush3.bf16.msra.mxu0 %v3044_v30  ;;  %v3084_v30 = vld [vmem:[%s3970_s1 + $0x500] sm:$0xff]  }
  0x7d   :  { %2765 = vmatpush3.bf16.msra.mxu1 %v3045_v31  ;;  %2744 = vmatprep.subr.bf16.mxu0 %v3046_v32  ;;  %v3085_v31 = vld [vmem:[%s3970_s1 + $0x580] sm:$0xff]   ;;  %v3086_v32 = vld [vmem:[%s3970_s1 + $0x548] sm:$0xff]  }
  0x7e   :  { %2766 = vmatprep.subr.bf16.mxu1 %v3047_v33  ;;  %v3087_v33 = vld [vmem:[%s3970_s1 + $0x5c8] sm:$0xff]  }
  0x80   :  { %2745 = vmatpush3.bf16.msra.mxu0 %v3048_v34  ;;  %v3088_v34 = vld [vmem:[%s3970_s1 + $0x508] sm:$0xff]  }
  0x81   :  { %2767 = vmatpush3.bf16.msra.mxu1 %v3049_v35  ;;  %2774 = vmatprep.subr.bf16.mxu0 %v3050_v48  ;;  %v3089_v35 = vld [vmem:[%s3970_s1 + $0x588] sm:$0xff]  }
  0x82   :  { %2796 = vmatprep.subr.bf16.mxu1 %v3051_v49  ;;  %v3102_v48 = vld [vmem:[%s3970_s1 + $0x568] sm:$0xff]  }
  0x83   :  { %1921 = vmatmul.mubr.bf16.vlgmr.msra.gmra.mrb[12].mxu0 %v87_v44  ;;  %v3098_v44 = vld [vmem:[%s3970_s1 + $0x560] sm:$0xff]   ;;  %v3103_v49 = vld [vmem:[%s3970_s1 + $0x5e8] sm:$0xff]  }
  0x84   :  { %1962 = vmatmul.mubr.bf16.vlgmr.msra.gmra.mrb[12].mxu1 %v89_v47  ;;  %2775 = vmatpush3.bf16.msra.mxu0 %v3052_v50  ;;  %v3101_v47 = vld [vmem:[%s3970_s1 + $0x5a0] sm:$0xff]   ;;  %v3104_v50 = vld [vmem:[%s3970_s1 + $0x528] sm:$0xff]  }
  0x85   :  { %2797 = vmatpush3.bf16.msra.mxu1 %v3053_v51  ;;  %2776 = vmatprep.subr.bf16.mxu0 %v3054_v52  ;;  %v3105_v51 = vld [vmem:[%s3970_s1 + $0x5a8] sm:$0xff]   ;;  %v3106_v52 = vld [vmem:[%s3970_s1 + $0x570] sm:$0xff]  }
  0x86   :  { %2798 = vmatprep.subr.bf16.mxu1 %v3055_v53  ;;  %2002 = vmatprep.mubr.bf16.mxu0 %v92_v20  ;;  %v3107_v53 = vld [vmem:[%s3970_s1 + $0x5f0] sm:$0xff]  }
  0x87   :  { %2043 = vmatprep.mubr.bf16.mxu1 %v94_v21 }
  0x88   :  { %2777 = vmatpush3.bf16.msra.mxu0 %v3056_v54  ;;  %v3108_v54 = vld [vmem:[%s3970_s1 + $0x530] sm:$0xff]  }
  0x89   :  { %2799 = vmatpush3.bf16.msra.mxu1 %v3057_v55  ;;  %2778 = vmatprep.subr.bf16.mxu0 %v3058_v56  ;;  %v3109_v55 = vld [vmem:[%s3970_s1 + $0x5b0] sm:$0xff]   ;;  %v3110_v56 = vld [vmem:[%s3970_s1 + $0x578] sm:$0xff]  }
  0x8a   :  { %2800 = vmatprep.subr.bf16.mxu1 %v3059_v57  ;;  %v3111_v57 = vld [vmem:[%s3970_s1 + $0x5f8] sm:$0xff]  }
  0x8c   :  { %2779 = vmatpush3.bf16.msra.mxu0 %v3060_v58  ;;  %v3112_v58 = vld [vmem:[%s3970_s1 + $0x538] sm:$0xff]  }
  0x8d   :  { %2801 = vmatpush3.bf16.msra.mxu1 %v3061_v59  ;;  %2780 = vmatprep.subr.bf16.mxu0 %v3062_v60  ;;  %v3113_v59 = vld [vmem:[%s3970_s1 + $0x5b8] sm:$0xff]   ;;  %v48_v60 = vld [vmem:[%s3971_s0 + $0xa8] sm:$0xff] }
  0x8e   :  { %2802 = vmatprep.subr.bf16.mxu1 %v3063_v61  ;;  %v72_v61 = vld [vmem:[%s3971_s0 + $0x168] sm:$0xff] }
  0x90   :  { %2781 = vmatpush3.bf16.msra.mxu0 %v3064_v62  ;;  %v96_v62 = vpack.c.bf16 %v72_v61, %v48_v60 }
  0x91   :  { %2803 = vmatpush3.bf16.msra.mxu1 %v3065_v63  ;;  %2782 = vmatprep.subr.bf16.mxu0 %v3066_v0  ;;  %v50_v63 = vld [vmem:[%s3971_s0 + $0xb8] sm:$0xff] }
  0x92   :  { %2804 = vmatprep.subr.bf16.mxu1 %v3067_v1  ;;  %v74_v0 = vld [vmem:[%s3971_s0 + $0x178] sm:$0xff]  ;;  %v47_v1 = vld [vmem:[%s3971_s0 + $0xa0] sm:$0xff] }
  0x94   :  { %2783 = vmatpush3.bf16.msra.mxu0 %v3068_v2  ;;  %v98_v2 = vpack.c.bf16 %v74_v0, %v50_v63 }
  0x95   :  { %2805 = vmatpush3.bf16.msra.mxu1 %v3069_v3  ;;  %2784 = vmatprep.subr.bf16.mxu0 %v3070_v4  ;;  %v71_v3 = vld [vmem:[%s3971_s0 + $0x160] sm:$0xff]  ;;  %v49_v4 = vld [vmem:[%s3971_s0 + $0xb0] sm:$0xff] }
  0x96   :  { %2806 = vmatprep.subr.bf16.mxu1 %v3071_v5  ;;  %v73_v5 = vld [vmem:[%s3971_s0 + $0x170] sm:$0xff] }
  0x98   :  { %2785 = vmatpush3.bf16.msra.mxu0 %v3072_v6  ;;  %v95_v6 = vpack.c.bf16 %v71_v3, %v47_v1  ;;  %v3126_v3 = vld [vmem:[%s3974_s5 + $0x20] sm:$0xff]  }
  0x99   :  { %2807 = vmatpush3.bf16.msra.mxu1 %v3073_v7  ;;  %2786 = vmatprep.subr.bf16.mxu0 %v3074_v8  ;;  %v97_v7 = vpack.c.bf16 %v73_v5, %v49_v4 }
  0x9a   :  { %2808 = vmatprep.subr.bf16.mxu1 %v3075_v9 }
  0x9c   :  { %2787 = vmatpush3.bf16.msra.mxu0 %v3076_v10  ;;  %v2378_v10 = vld [vmem:[%s3972_s2] ss:$0 sm:$0xff] }
  0x9d   :  { %2809 = vmatpush3.bf16.msra.mxu1 %v3077_v11  ;;  %2788 = vmatprep.subr.bf16.mxu0 %v3078_v12 }
  0x9e   :  { %2810 = vmatprep.subr.bf16.mxu1 %v3079_v13 }
  0xa0   :  { %2789 = vmatpush3.bf16.msra.mxu0 %v3080_v14 }
  0xa1   :  { %2811 = vmatpush3.bf16.msra.mxu1 %v3081_v15  ;;  %2818 = vmatprep.subr.bf16.mxu0 %v3082_v28  ;;  %v3116_v28 = vld [vmem:[%s3973_s3 + $0x10] sm:$0xff]  }
  0xa2   :  { %2840 = vmatprep.subr.bf16.mxu1 %v3083_v29  ;;  %v3117_v29 = vld [vmem:[%s3973_s3 + $0x18] sm:$0xff]  }
  0xa3   :  { %2003 = vmatmul.mubr.bf16.vlgmr.msra.gmra.mrb[16].mxu0 %v91_v25  ;;  %v3130_v25 = vmov 0.0  }
  0xa4   :  { %2044 = vmatmul.mubr.bf16.vlgmr.msra.gmra.mrb[16].mxu1 %v93_v27  ;;  %2819 = vmatpush3.bf16.msra.mxu0 %v3084_v30  ;;  %v3115_v27 = vld [vmem:[%s3973_s3 + $0x8] sm:$0xff]   ;;  %v3118_v30 = vld [vmem:[%s3973_s3 + $0x20] sm:$0xff]  }
  0xa5   :  { %2841 = vmatpush3.bf16.msra.mxu1 %v3085_v31  ;;  %2820 = vmatprep.subr.bf16.mxu0 %v3086_v32 }
  0xa6   :  { %2842 = vmatprep.subr.bf16.mxu1 %v3087_v33  ;;  %2084 = vmatprep.mubr.bf16.mxu0 %v96_v62 }
  0xa7   :  { %2125 = vmatprep.mubr.bf16.mxu1 %v98_v2 }
  0xa8   :  { %2821 = vmatpush3.bf16.msra.mxu0 %v3088_v34 }
  0xa9   :  { %2843 = vmatpush3.bf16.msra.mxu1 %v3089_v35  ;;  %2822 = vmatprep.subr.bf16.mxu0 %v3090_v36 }
  0xaa   :  { %2844 = vmatprep.subr.bf16.mxu1 %v3091_v37 }
  0xac   :  { %2823 = vmatpush3.bf16.msra.mxu0 %v3092_v38 }
  0xad   :  { %2845 = vmatpush3.bf16.msra.mxu1 %v3093_v39  ;;  %2824 = vmatprep.subr.bf16.mxu0 %v3094_v40 }
  0xae   :  { %2846 = vmatprep.subr.bf16.mxu1 %v3095_v41 }
  0xb0   :  { %2825 = vmatpush3.bf16.msra.mxu0 %v3096_v42 }
  0xb1   :  { %2847 = vmatpush3.bf16.msra.mxu1 %v3097_v43  ;;  %2826 = vmatprep.subr.bf16.mxu0 %v3098_v44 }
  0xb2   :  { %2848 = vmatprep.subr.bf16.mxu1 %v3099_v45 }
  0xb4   :  { %2827 = vmatpush3.bf16.msra.mxu0 %v3100_v46 }
  0xb5   :  { %2849 = vmatpush3.bf16.msra.mxu1 %v3101_v47  ;;  %2828 = vmatprep.subr.bf16.mxu0 %v3102_v48  ;;  %v3119_v47 = vld [vmem:[%s3973_s3 + $0x28] sm:$0xff]   ;;  %v3120_v48 = vld [vmem:[%s3973_s3 + $0x30] sm:$0xff]  }
  0xb6   :  { %2850 = vmatprep.subr.bf16.mxu1 %v3103_v49  ;;  %v3121_v49 = vld [vmem:[%s3973_s3 + $0x38] sm:$0xff]  }
  0xb8   :  { %2829 = vmatpush3.bf16.msra.mxu0 %v3104_v50  ;;  %v3122_v50 = vld [vmem:[%s3974_s5] sm:$0xff]  }
  0xb9   :  { %2851 = vmatpush3.bf16.msra.mxu1 %v3105_v51  ;;  %2830 = vmatprep.subr.bf16.mxu0 %v3106_v52  ;;  %v3123_v51 = vld [vmem:[%s3974_s5 + $0x8] sm:$0xff]   ;;  %v3124_v52 = vld [vmem:[%s3974_s5 + $0x10] sm:$0xff]  }
  0xba   :  { %2852 = vmatprep.subr.bf16.mxu1 %v3107_v53 }
  0xbc   :  { %2831 = vmatpush3.bf16.msra.mxu0 %v3108_v54 }
  0xbd   :  { %2853 = vmatpush3.bf16.msra.mxu1 %v3109_v55  ;;  %2832 = vmatprep.subr.bf16.mxu0 %v3110_v56 }
  0xbe   :  { %2854 = vmatprep.subr.bf16.mxu1 %v3111_v57  ;;  %v3125_v57 = vld [vmem:[%s3974_s5 + $0x18] sm:$0xff]  }
  0xc0   :  { %2833 = vmatpush3.bf16.msra.mxu0 %v3112_v58 }
  0xc1   :  { %2855 = vmatpush3.bf16.msra.mxu1 %v3113_v59  ;;  %2880 = vmatprep.subr.bf16.mxu0 %v3130_v25 }
  0xc2   :  { %2900 = vmatprep.subr.bf16.mxu1 %v3130_v25 }
  0xc3   :  { %2085 = vmatmul.mubr.bf16.vlgmr.msra.gmra.mrb[20].mxu0 %v95_v6 }
  0xc4   :  { %2126 = vmatmul.mubr.bf16.vlgmr.msra.gmra.mrb[20].mxu1 %v97_v7  ;;  %2881 = vmatpush3.bf16.msra.mxu0 %v3114_v26  ;;  %v3127_v7 = vld [vmem:[%s3974_s5 + $0x28] sm:$0xff]  }
  0xc5   :  { %2882 = vmatprep.subr.bf16.mxu0 %v3130_v25  ;;  %2896 = vmatprep.mubr.msk.bf16.mxu0 %vm3131_vm0, %v3130_v25 }
  0xc6   :  { %2916 = vmatprep.mubr.msk.bf16.mxu1 %vm3131_vm0, %v3130_v25  ;;  %2901 = vmatpush3.bf16.msra.mxu1 %v3122_v50 }
  0xc7   :  { %2902 = vmatprep.subr.bf16.mxu1 %v3130_v25 }
  0xc8   :  { %2883 = vmatpush3.bf16.msra.mxu0 %v3115_v27 }
  0xc9   :  { %2884 = vmatprep.subr.bf16.mxu0 %v3130_v25 }
  0xca   :  { %2903 = vmatpush3.bf16.msra.mxu1 %v3123_v51 }
  0xcb   :  { %2904 = vmatprep.subr.bf16.mxu1 %v3130_v25 }
  0xcc   :  { %2885 = vmatpush3.bf16.msra.mxu0 %v3116_v28 }
  0xcd   :  { %2886 = vmatprep.subr.bf16.mxu0 %v3130_v25 }
  0xce   :  { %2905 = vmatpush3.bf16.msra.mxu1 %v3124_v52 }
  0xcf   :  { %2906 = vmatprep.subr.bf16.mxu1 %v3130_v25 }
  0xd0   :  { %2887 = vmatpush3.bf16.msra.mxu0 %v3117_v29 }
  0xd1   :  { %2888 = vmatprep.subr.bf16.mxu0 %v3130_v25 }
  0xd2   :  { %2907 = vmatpush3.bf16.msra.mxu1 %v3125_v57 }
  0xd3   :  { %2908 = vmatprep.subr.bf16.mxu1 %v3130_v25 }
  0xd4   :  { %2889 = vmatpush3.bf16.msra.mxu0 %v3118_v30 }
  0xd5   :  { %2890 = vmatprep.subr.bf16.mxu0 %v3130_v25 }
  0xd6   :  { %2909 = vmatpush3.bf16.msra.mxu1 %v3126_v3 }
  0xd7   :  { %2910 = vmatprep.subr.bf16.mxu1 %v3130_v25 }
  0xd8   :  { %2891 = vmatpush3.bf16.msra.mxu0 %v3119_v47 }
  0xd9   :  { %2892 = vmatprep.subr.bf16.mxu0 %v3130_v25 }
  0xda   :  { %2911 = vmatpush3.bf16.msra.mxu1 %v3127_v7 }
  0xdb   :  { %2912 = vmatprep.subr.bf16.mxu1 %v3130_v25 }
  0xdc   :  { %2893 = vmatpush3.bf16.msra.mxu0 %v3120_v48 }
  0xdd   :  { %2894 = vmatprep.subr.bf16.mxu0 %v3130_v25 }
  0xe0   :  { %2895 = vmatpush3.bf16.msra.mxu0 %v3121_v49 }
  0xf6   :  { %v2614_v8 = vpop.f32.mrb[0].mxu0 }
  0xf7   :  { %v2636_v9 = vpop.f32.mrb[0].mxu1  ;;  %v2615_v11 = vpop.f32.mrb[1].mxu0 }
  0xf8   :  { %v2616_v12 = vadd.f32 %v2615_v11, %v2614_v8  ;;  %v2637_v13 = vpop.f32.mrb[1].mxu1  ;;  %v2617_v14 = vpop.f32.mrb[2].mxu0 }
  0xf9   :  { %v2638_v15 = vadd.f32 %v2637_v13, %v2636_v9  ;;  %v2639_v16 = vpop.f32.mrb[2].mxu1  ;;  %v2618_v17 = vpop.f32.mrb[3].mxu0 }
  0xfa   :  { %v1677_v18 = vadd.f32 %v2616_v12, %v2378_v10  ;;  %v2619_v19 = vadd.f32 %v2618_v17, %v2617_v14  ;;  %v2640_v20 = vpop.f32.mrb[3].mxu1 }
  0xfb   :  { %v2641_v21 = vadd.f32 %v2640_v20, %v2639_v16 }
  0xfc   :  { %v1718_v22 = vadd.f32 %v2638_v15, %v1677_v18  ;;  %v1680_v23 = vadd.f32 %v2619_v19, %v2378_v10 }
  0xfe   :  { %v1721_v24 = vadd.f32 %v2641_v21, %v1680_v23 }
 0x116   :  { %v2658_v31 = vpop.f32.mrb[4].mxu0 }
 0x117   :  { %v2680_v32 = vpop.f32.mrb[4].mxu1  ;;  %v2659_v33 = vpop.f32.mrb[5].mxu0 }
 0x118   :  { %v2660_v34 = vadd.f32 %v2659_v33, %v2658_v31  ;;  %v2681_v35 = vpop.f32.mrb[5].mxu1  ;;  %v2661_v36 = vpop.f32.mrb[6].mxu0 }
 0x119   :  { %v2682_v37 = vadd.f32 %v2681_v35, %v2680_v32  ;;  %v2683_v38 = vpop.f32.mrb[6].mxu1  ;;  %v2662_v39 = vpop.f32.mrb[7].mxu0 }
 0x11a   :  { %v1759_v40 = vadd.f32 %v2660_v34, %v1718_v22  ;;  %v2663_v41 = vadd.f32 %v2662_v39, %v2661_v36  ;;  %v2684_v42 = vpop.f32.mrb[7].mxu1 }
 0x11b   :  { %v2685_v43 = vadd.f32 %v2684_v42, %v2683_v38 }
 0x11c   :  { %v1800_v44 = vadd.f32 %v2682_v37, %v1759_v40  ;;  %v1762_v45 = vadd.f32 %v2663_v41, %v1721_v24 }
 0x11e   :  { %v1803_v46 = vadd.f32 %v2685_v43, %v1762_v45 }
 0x136   :  { %v2702_v53 = vpop.f32.mrb[8].mxu0 }
 0x137   :  { %v2724_v54 = vpop.f32.mrb[8].mxu1  ;;  %v2703_v55 = vpop.f32.mrb[9].mxu0 }
 0x138   :  { %v2725_v56 = vpop.f32.mrb[9].mxu1  ;;  %v2704_v58 = vadd.f32 %v2703_v55, %v2702_v53  ;;  %v2705_v60 = vpop.f32.mrb[10].mxu0 }
 0x139   :  { %v2726_v59 = vadd.f32 %v2725_v56, %v2724_v54  ;;  %v2727_v61 = vpop.f32.mrb[10].mxu1  ;;  %v2706_v62 = vpop.f32.mrb[11].mxu0 }
 0x13a   :  { %v2728_v63 = vpop.f32.mrb[11].mxu1  ;;  %v1841_v0 = vadd.f32 %v2704_v58, %v1800_v44  ;;  %v2707_v1 = vadd.f32 %v2706_v62, %v2705_v60  ;;  %v3128_v60 = vld [vmem:[%s3974_s5 + $0x30] sm:$0xff]   ;;  %v2571_v62 = vld [vmem:[%s3975_s4] ss:$0 sm:$0xff] }
 0x13b   :  { %v2729_v2 = vadd.f32 %v2728_v63, %v2727_v61  ;;  %2913 = vmatpush3.bf16.msra.mxu1 %v3128_v60  ;;  %v3129_v61 = vld [vmem:[%s3974_s5 + $0x38] sm:$0xff]  }
 0x13c   :  { %v1882_v4 = vadd.f32 %v2726_v59, %v1841_v0  ;;  %v1844_v5 = vadd.f32 %v2707_v1, %v1803_v46  ;;  %2914 = vmatprep.subr.bf16.mxu1 %v3130_v25  ;;  %v2580_v25 = vld [vmem:[%s3976_s6] ss:$0 sm:$0xff] }
 0x13e   :  { %v1885_v6 = vadd.f32 %v2729_v2, %v1844_v5 }
 0x13f   :  { %2915 = vmatpush3.bf16.msra.mxu1 %v3129_v61 }
 0x156   :  { %v2746_v8 = vpop.f32.mrb[12].mxu0 }
 0x157   :  { %v2768_v9 = vpop.f32.mrb[12].mxu1  ;;  %v2747_v10 = vpop.f32.mrb[13].mxu0 }
 0x158   :  { %v2748_v11 = vadd.f32 %v2747_v10, %v2746_v8  ;;  %v2769_v12 = vpop.f32.mrb[13].mxu1  ;;  %v2749_v13 = vpop.f32.mrb[14].mxu0 }
 0x159   :  { %v2770_v14 = vadd.f32 %v2769_v12, %v2768_v9  ;;  %v2771_v15 = vpop.f32.mrb[14].mxu1  ;;  %v2750_v16 = vpop.f32.mrb[15].mxu0 }
 0x15a   :  { %v1923_v17 = vadd.f32 %v2748_v11, %v1882_v4  ;;  %v2751_v18 = vadd.f32 %v2750_v16, %v2749_v13  ;;  %v2772_v19 = vpop.f32.mrb[15].mxu1 }
 0x15b   :  { %v2773_v20 = vadd.f32 %v2772_v19, %v2771_v15 }
 0x15c   :  { %v1964_v21 = vadd.f32 %v2770_v14, %v1923_v17  ;;  %v1926_v22 = vadd.f32 %v2751_v18, %v1885_v6 }
 0x15e   :  { %v1967_v23 = vadd.f32 %v2773_v20, %v1926_v22 }
 0x176   :  { %v2790_v24 = vpop.f32.mrb[16].mxu0 }
 0x177   :  { %v2812_v26 = vpop.f32.mrb[16].mxu1  ;;  %v2791_v27 = vpop.f32.mrb[17].mxu0 }
 0x178   :  { %v2792_v28 = vadd.f32 %v2791_v27, %v2790_v24  ;;  %v2813_v29 = vpop.f32.mrb[17].mxu1  ;;  %v2793_v30 = vpop.f32.mrb[18].mxu0 }
 0x179   :  { %v2814_v31 = vadd.f32 %v2813_v29, %v2812_v26  ;;  %v2815_v32 = vpop.f32.mrb[18].mxu1  ;;  %v2794_v33 = vpop.f32.mrb[19].mxu0 }
 0x17a   :  { %v2005_v34 = vadd.f32 %v2792_v28, %v1964_v21  ;;  %v2795_v35 = vadd.f32 %v2794_v33, %v2793_v30  ;;  %v2816_v36 = vpop.f32.mrb[19].mxu1 }
 0x17b   :  { %v2817_v37 = vadd.f32 %v2816_v36, %v2815_v32 }
 0x17c   :  { %v2046_v38 = vadd.f32 %v2814_v31, %v2005_v34  ;;  %v2008_v39 = vadd.f32 %v2795_v35, %v1967_v23 }
 0x17e   :  { %v2049_v40 = vadd.f32 %v2817_v37, %v2008_v39 }
 0x196   :  { %v2834_v41 = vpop.f32.mrb[20].mxu0 }
 0x197   :  { %v2856_v42 = vpop.f32.mrb[20].mxu1  ;;  %v2835_v43 = vpop.f32.mrb[21].mxu0 }
 0x198   :  { %v2857_v44 = vpop.f32.mrb[21].mxu1  ;;  %v2836_v45 = vadd.f32 %v2835_v43, %v2834_v41  ;;  %v2837_v47 = vpop.f32.mrb[22].mxu0 }
 0x199   :  { %v2858_v46 = vadd.f32 %v2857_v44, %v2856_v42  ;;  %v2859_v48 = vpop.f32.mrb[22].mxu1  ;;  %v2838_v49 = vpop.f32.mrb[23].mxu0 }
 0x19a   :  { %v2860_v50 = vpop.f32.mrb[23].mxu1  ;;  %v2087_v51 = vadd.f32 %v2836_v45, %v2046_v38  ;;  %v2839_v52 = vadd.f32 %v2838_v49, %v2837_v47 }
 0x19b   :  { %v2861_v53 = vadd.f32 %v2860_v50, %v2859_v48 }
 0x19c   :  { %v2128_v54 = vadd.f32 %v2858_v46, %v2087_v51  ;;  %v2090_v55 = vadd.f32 %v2839_v52, %v2049_v40 }
 0x19e   :  { %v2131_v56 = vadd.f32 %v2861_v53, %v2090_v55  ;;  %v2134_v57 = vmax.f32 %v2128_v54, 0.0 }
 0x1a0   :  { %v2135_v58 = vmax.f32 %v2131_v56, 0.0 }
 0x1a2   :  { %v2136_v59 = vpack.c.bf16 %v2135_v58, %v2134_v57 }
 0x1a4   :  { %2897 = vmatmul.mubr.bf16.vlgmr.msra.gmra.mrb[24].mxu0 %v2136_v59 }
 0x277   :  { %v2242_v63 = vpop.f32.mrb[24].mxu0 }
 0x278   :  { %v2243_v0 = vadd.f32 %v2571_v62, %v2242_v63  ;;  %v2898_v1 = vpop.f32.mrb[25].mxu0 }
 0x279   :  { %v2245_v2 = vpop.f32.mrb[26].mxu0 }
 0x27a   :  { %v2246_v3 = vadd.f32 %v2571_v62, %v2245_v2  ;;  %v2899_v4 = vpop.f32.mrb[27].mxu0  ;;  %v2249_v5 = vmax.f32 %v2243_v0, 0.0 }
 0x27c   :  { %v2250_v6 = vmax.f32 %v2246_v3, 0.0 }
 0x27e   :  { %v2251_v7 = vpack.c.bf16 %v2250_v6, %v2249_v5 }
 0x280   :  { %2917 = vmatmul.mubr.bf16.vlgmr.msra.gmra.mrb[24].mxu1 %v2251_v7 }
 0x353   :  { %v2357_v8 = vpop.f32.mrb[24].mxu1 }
 0x354   :  { %v2918_v9 = vpop.f32.mrb[25].mxu1  ;;  %v2358_v11 = vadd.f32 %v2580_v25, %v2357_v8 }
 0x355   :  { %v2360_v10 = vpop.f32.mrb[26].mxu1 }
 0x356   :  { %v2361_v12 = vadd.f32 %v2580_v25, %v2360_v10  ;;  %v2919_v13 = vpop.f32.mrb[27].mxu1 }
 0x358   :  { %v2596_v14 = vpack.c.bf16 %v2361_v12, %v2358_v11 }
 0x35a   :  { %2597 = vst [vmem:[%s3977_s7] sm:$0xff] %v2596_v14  }

</bundles_post_ra>
